<compile_context>
chip_gen: v6e
topology: v6e:2x2x1
jax: 0.10.0
libtpu: 0.0.40
codegen_flags: <defaults>
</compile_context>

<pallas_src>
import math

import jax
import jax.numpy as jnp
from jax.experimental import pallas as pl
from jax.experimental.pallas import tpu as pltpu


def _round_up(n, m):
    return ((n + m - 1) // m) * m


def dqn_kernel(x_ref, w1_ref, b1_ref, w2_ref, b2_ref, w3_ref, b3_ref, o_ref):
    w1 = w1_ref[...]
    compute_dtype = w1.dtype          # bf16 (or f32) MXU operand dtype
    x = x_ref[...].astype(compute_dtype)

    # fc1 + ReLU  (f32 accumulate on the MXU, f32 epilogue)
    h1 = jnp.dot(x, w1, preferred_element_type=jnp.float32) + b1_ref[...]
    h1 = jnp.maximum(h1, 0.0).astype(compute_dtype)

    # fc2 + ReLU
    h2 = jnp.dot(h1, w2_ref[...], preferred_element_type=jnp.float32) + b2_ref[...]
    h2 = jnp.maximum(h2, 0.0).astype(compute_dtype)

    # fc3 (lane-padded to 128 outputs; no activation)
    out = jnp.dot(h2, w3_ref[...], preferred_element_type=jnp.float32) + b3_ref[...]
    o_ref[...] = out.astype(o_ref.dtype)


def dqn_forward(x, params, out_dim, *, block_m=128):
    """x: (B, input_dim) f32.  params: dict w1,b1,w2,b2,w3,b3 (w3/b3 lane-padded).

    Returns (B, out_dim) f32 Q-values.
    """
    w1, b1 = params["w1"], params["b1"]
    w2, b2 = params["w2"], params["b2"]
    w3, b3 = params["w3"], params["b3"]

    B, in_dim = x.shape
    n_pad = w3.shape[1]               # lane-dense padded output width (multiple of 128)

    # Batch tile: don't blow tiny batches up to 128; keep sublane (8) alignment.
    block_m = min(block_m, _round_up(B, 8))
    b_pad = _round_up(B, block_m)
    if b_pad != B:
        x = jnp.pad(x, ((0, b_pad - B), (0, 0)))
    num_tiles = b_pad // block_m

    # Weights/biases: full-array blocks, constant index_map -> VMEM-resident
    # (DMA'd once, reused for every batch tile).
    def resident(a):
        return pl.BlockSpec(a.shape, lambda i: (0,) * a.ndim)

    flops = 2 * b_pad * (in_dim * w1.shape[1]
                         + w2.shape[0] * w2.shape[1]
                         + w3.shape[0] * n_pad)
    bytes_accessed = (x.size * x.dtype.itemsize
                      + sum(int(p.size) * p.dtype.itemsize
                            for p in (w1, b1, w2, b2, w3, b3))
                      + b_pad * n_pad * 4)

    out = pl.pallas_call(
        dqn_kernel,
        out_shape=jax.ShapeDtypeStruct((b_pad, n_pad), jnp.float32),
        grid=(num_tiles,),
        in_specs=[pl.BlockSpec((block_m, in_dim), lambda i: (i, 0)),
                  resident(w1), resident(b1),
                  resident(w2), resident(b2),
                  resident(w3), resident(b3)],
        out_specs=pl.BlockSpec((block_m, n_pad), lambda i: (i, 0)),
        compiler_params=pltpu.CompilerParams(
            dimension_semantics=("parallel",)),
        cost_estimate=pl.CostEstimate(flops=flops, transcendentals=0,
                                      bytes_accessed=bytes_accessed),
    )(x, w1, b1, w2, b2, w3, b3)

    return out[:B, :out_dim]


def init_params(key, input_dim, output_dim, *, weight_dtype=jnp.bfloat16,
                lane_pad=128):
    """PyTorch-style nn.Linear init (uniform +/- 1/sqrt(fan_in)).

    Weights stored as (in_features, out_features) in `weight_dtype`; biases kept
    in f32 (epilogue runs in f32).  The final layer is zero-padded to a multiple
    of `lane_pad` output features for lane-dense stores.
    """
    dims = [(input_dim, 256), (256, 128), (128, output_dim)]
    params = {}
    for i, (fan_in, fan_out) in enumerate(dims, start=1):
        key, kw, kb = jax.random.split(key, 3)
        bound = 1.0 / math.sqrt(fan_in)
        w = jax.random.uniform(kw, (fan_in, fan_out), jnp.float32, -bound, bound)
        b = jax.random.uniform(kb, (1, fan_out), jnp.float32, -bound, bound)
        if i == 3:  # pad the final layer's output lanes with zeros
            n_pad = _round_up(fan_out, lane_pad)
            w = jnp.pad(w, ((0, 0), (0, n_pad - fan_out)))
            b = jnp.pad(b, ((0, 0), (0, n_pad - fan_out)))
        params[f"w{i}"] = w.astype(weight_dtype)
        params[f"b{i}"] = b  # f32
    return params


def reference_forward(x, params, out_dim):
    """Pure-JAX reference mirroring the kernel's precision path."""
    cdt = params["w1"].dtype
    h1 = jnp.dot(x.astype(cdt), params["w1"],
                 preferred_element_type=jnp.float32) + params["b1"]
    h1 = jnp.maximum(h1, 0.0)
    h2 = jnp.dot(h1.astype(cdt), params["w2"],
                 preferred_element_type=jnp.float32) + params["b2"]
    h2 = jnp.maximum(h2, 0.0)
    out = jnp.dot(h2.astype(cdt), params["w3"],
                  preferred_element_type=jnp.float32) + params["b3"]
    return out[:, :out_dim]


if __name__ == "__main__":
    # Lunar Lander: observation dim = 8, action dim = 4.
    input_dim, output_dim = 8, 4

    key = jax.random.PRNGKey(0)
    key, kx1, kx2 = jax.random.split(key, 3)
    params = init_params(key, input_dim, output_dim)

    # Small per-step batch (launch-overhead regime).
    x_small = jax.random.normal(kx1, (8, input_dim), jnp.float32)
    out_small = jax.block_until_ready(dqn_forward(x_small, params, output_dim))
    ref_small = reference_forward(x_small, params, output_dim)
    assert out_small.shape == (8, output_dim)
    assert jnp.allclose(out_small, ref_small, atol=2e-2, rtol=2e-2)

    # Larger, non-multiple-of-tile batch exercising the batch grid + padding.
    x_big = jax.random.normal(kx2, (200, input_dim), jnp.float32)
    out_big = jax.block_until_ready(dqn_forward(x_big, params, output_dim))
    ref_big = reference_forward(x_big, params, output_dim)
    assert out_big.shape == (200, output_dim)
    assert jnp.allclose(out_big, ref_big, atol=2e-2, rtol=2e-2)

    print("KERNEL_OK")
</pallas_src>

<mosaic_0001>
module attributes {stable_mosaic.version = 11 : i64} {
  func.func @dqn_kernel(%arg0: i32, %arg1: memref<8x8xf32, #tpu.memory_space<vmem>>, %arg2: memref<8x256xbf16, #tpu.memory_space<vmem>>, %arg3: memref<1x256xf32, #tpu.memory_space<vmem>>, %arg4: memref<256x128xbf16, #tpu.memory_space<vmem>>, %arg5: memref<1x128xf32, #tpu.memory_space<vmem>>, %arg6: memref<128x128xbf16, #tpu.memory_space<vmem>>, %arg7: memref<1x128xf32, #tpu.memory_space<vmem>>, %arg8: memref<8x128xf32, #tpu.memory_space<vmem>>) attributes {dimension_semantics = [#tpu.dimension_semantics<parallel>], iteration_bounds = array<i64: 1>, scalar_prefetch = 0 : i64, scratch_operands = 0 : i64, tpu.core_type = #tpu.core_type<tc>, window_params = [{transform_indices = @transform_0, window_bounds = array<i64: 8, 8>}, {pipeline_mode = #tpu.pipeline_mode<synchronous>, transform_indices = @transform_1, window_bounds = array<i64: 8, 256>}, {pipeline_mode = #tpu.pipeline_mode<synchronous>, transform_indices = @transform_2, window_bounds = array<i64: 1, 256>}, {pipeline_mode = #tpu.pipeline_mode<synchronous>, transform_indices = @transform_3, window_bounds = array<i64: 256, 128>}, {pipeline_mode = #tpu.pipeline_mode<synchronous>, transform_indices = @transform_4, window_bounds = array<i64: 1, 128>}, {pipeline_mode = #tpu.pipeline_mode<synchronous>, transform_indices = @transform_5, window_bounds = array<i64: 128, 128>}, {pipeline_mode = #tpu.pipeline_mode<synchronous>, transform_indices = @transform_6, window_bounds = array<i64: 1, 128>}, {transform_indices = @transform_7, window_bounds = array<i64: 8, 128>}]} {
    %c0 = arith.constant 0 : index
    %c0_0 = arith.constant 0 : index
    %0 = vector.load %arg2[%c0, %c0_0] : memref<8x256xbf16, #tpu.memory_space<vmem>>, vector<8x256xbf16>
    %c0_1 = arith.constant 0 : index
    %c0_2 = arith.constant 0 : index
    %1 = vector.load %arg1[%c0_1, %c0_2] : memref<8x8xf32, #tpu.memory_space<vmem>>, vector<8x8xf32>
    %2 = arith.truncf %1 : vector<8x8xf32> to vector<8x8xbf16>
    %cst = arith.constant dense<0.000000e+00> : vector<8x256xf32>
    %3 = tpu.matmul %2, %0, %cst {dimension_numbers = #tpu.dot_dimension_numbers<[1], [0], [0], [1], [0, 0, 1, 1], [], []>} : vector<8x8xbf16>, vector<8x256xbf16>, vector<8x256xf32> -> vector<8x256xf32>
    %c0_3 = arith.constant 0 : index
    %c0_4 = arith.constant 0 : index
    %4 = vector.load %arg3[%c0_3, %c0_4] : memref<1x256xf32, #tpu.memory_space<vmem>>, vector<1x256xf32>
    %5 = vector.broadcast %4 : vector<1x256xf32> to vector<8x256xf32>
    %6 = arith.addf %3, %5 : vector<8x256xf32>
    %cst_5 = arith.constant 0.000000e+00 : f32
    %7 = vector.broadcast %cst_5 : f32 to vector<8x256xf32>
    %8 = arith.maximumf %6, %7 : vector<8x256xf32>
    %9 = arith.truncf %8 : vector<8x256xf32> to vector<8x256xbf16>
    %c0_6 = arith.constant 0 : index
    %c0_7 = arith.constant 0 : index
    %10 = vector.load %arg4[%c0_6, %c0_7] : memref<256x128xbf16, #tpu.memory_space<vmem>>, vector<256x128xbf16>
    %cst_8 = arith.constant dense<0.000000e+00> : vector<8x128xf32>
    %11 = tpu.matmul %9, %10, %cst_8 {dimension_numbers = #tpu.dot_dimension_numbers<[1], [0], [0], [1], [0, 0, 1, 1], [], []>} : vector<8x256xbf16>, vector<256x128xbf16>, vector<8x128xf32> -> vector<8x128xf32>
    %c0_9 = arith.constant 0 : index
    %c0_10 = arith.constant 0 : index
    %12 = vector.load %arg5[%c0_9, %c0_10] : memref<1x128xf32, #tpu.memory_space<vmem>>, vector<1x128xf32>
    %13 = vector.broadcast %12 : vector<1x128xf32> to vector<8x128xf32>
    %14 = arith.addf %11, %13 : vector<8x128xf32>
    %cst_11 = arith.constant 0.000000e+00 : f32
    %15 = vector.broadcast %cst_11 : f32 to vector<8x128xf32>
    %16 = arith.maximumf %14, %15 : vector<8x128xf32>
    %17 = arith.truncf %16 : vector<8x128xf32> to vector<8x128xbf16>
    %c0_12 = arith.constant 0 : index
    %c0_13 = arith.constant 0 : index
    %18 = vector.load %arg6[%c0_12, %c0_13] : memref<128x128xbf16, #tpu.memory_space<vmem>>, vector<128x128xbf16>
    %cst_14 = arith.constant dense<0.000000e+00> : vector<8x128xf32>
    %19 = tpu.matmul %17, %18, %cst_14 {dimension_numbers = #tpu.dot_dimension_numbers<[1], [0], [0], [1], [0, 0, 1, 1], [], []>} : vector<8x128xbf16>, vector<128x128xbf16>, vector<8x128xf32> -> vector<8x128xf32>
    %c0_15 = arith.constant 0 : index
    %c0_16 = arith.constant 0 : index
    %20 = vector.load %arg7[%c0_15, %c0_16] : memref<1x128xf32, #tpu.memory_space<vmem>>, vector<1x128xf32>
    %21 = vector.broadcast %20 : vector<1x128xf32> to vector<8x128xf32>
    %22 = arith.addf %19, %21 : vector<8x128xf32>
    %c0_17 = arith.constant 0 : index
    %c0_18 = arith.constant 0 : index
    %23 = vector.load %arg8[%c0_17, %c0_18] : memref<8x128xf32, #tpu.memory_space<vmem>>, vector<8x128xf32>
    tpu.vector_store %arg8[%c0_17, %c0_18], %22 {strides = array<i32>} : memref<8x128xf32, #tpu.memory_space<vmem>>, vector<8x128xf32>,
    return
  }
  func.func @transform_0(%arg0: i32) -> (i32, i32) {
    %c0_i32 = arith.constant 0 : i32
    %c0_i32_0 = arith.constant 0 : i32
    return %arg0, %c0_i32 : i32, i32
  }
  func.func @transform_1(%arg0: i32) -> (i32, i32) {
    %c0_i32 = arith.constant 0 : i32
    %c0_i32_0 = arith.constant 0 : i32
    %c0_i32_1 = arith.constant 0 : i32
    return %c0_i32, %c0_i32_0 : i32, i32
  }
  func.func @transform_2(%arg0: i32) -> (i32, i32) {
    %c0_i32 = arith.constant 0 : i32
    %c0_i32_0 = arith.constant 0 : i32
    %c0_i32_1 = arith.constant 0 : i32
    return %c0_i32, %c0_i32_0 : i32, i32
  }
  func.func @transform_3(%arg0: i32) -> (i32, i32) {
    %c0_i32 = arith.constant 0 : i32
    %c0_i32_0 = arith.constant 0 : i32
    %c0_i32_1 = arith.constant 0 : i32
    return %c0_i32, %c0_i32_0 : i32, i32
  }
  func.func @transform_4(%arg0: i32) -> (i32, i32) {
    %c0_i32 = arith.constant 0 : i32
    %c0_i32_0 = arith.constant 0 : i32
    %c0_i32_1 = arith.constant 0 : i32
    return %c0_i32, %c0_i32_0 : i32, i32
  }
  func.func @transform_5(%arg0: i32) -> (i32, i32) {
    %c0_i32 = arith.constant 0 : i32
    %c0_i32_0 = arith.constant 0 : i32
    %c0_i32_1 = arith.constant 0 : i32
    return %c0_i32, %c0_i32_0 : i32, i32
  }
  func.func @transform_6(%arg0: i32) -> (i32, i32) {
    %c0_i32 = arith.constant 0 : i32
    %c0_i32_0 = arith.constant 0 : i32
    %c0_i32_1 = arith.constant 0 : i32
    return %c0_i32, %c0_i32_0 : i32, i32
  }
  func.func @transform_7(%arg0: i32) -> (i32, i32) {
    %c0_i32 = arith.constant 0 : i32
    %c0_i32_0 = arith.constant 0 : i32
    return %arg0, %c0_i32 : i32, i32
  }
}

</mosaic_0001>

<bundles_post_ra>
// kernel: tpu_custom_call.1
= control target key start
LH: loop header
LB: loop body
LE: loop exit
PB: predicated region body
PF: predicated region fallthrough
CT: control target
= control target key end

     0   :  { %12 = vsyncpa [#allocation3], 0  ;;  %s760_s0 = inlined_call_operand.hbm [shape: f32[8,8], index: 0, kind: input, shape index: {}]   ;;  %s761_s1 = inlined_call_operand.hbm [shape: bf16[8,256], index: 1, kind: input, shape index: {}]   ;;  %s762_s2 = inlined_call_operand.vmem [shape: f32[1,256], index: 2, kind: input, shape index: {}]   ;;  %s763_s3 = inlined_call_operand.hbm [shape: bf16[256,128], index: 3, kind: input, shape index: {}]   ;;  %s764_s4 = inlined_call_operand.vmem [shape: f32[1,128], index: 4, kind: input, shape index: {}]   ;;  %s765_s5 = inlined_call_operand.hbm [shape: bf16[128,128], index: 5, kind: input, shape index: {}]   ;;  %s766_s6 = inlined_call_operand.vmem [shape: f32[1,128], index: 6, kind: input, shape index: {}]   ;;  %s767_s7 = inlined_call_operand.hbm [shape: f32[8,128], index: 7, kind: output, shape index: {}]  }
   0x1   :  { %13 = vsyncpa [#allocation6], 0 }
   0x2   :  { %14 = vsyncpa [#allocation9], 0 }
   0x3   :  { %15 = vsyncpa [#allocation4], 0  ;;  %s686_s24 = smov [#allocation5]   ;;  %s687_s26 = smov [#allocation2]  }
   0x4   :  { %s32_s25 = sshll.u32 %s686_s24, 4  ;;  %s22_s27 = sshll.u32 %s687_s26, 4  ;;  %s33_s25 = int_to_ptr.vmem [resolvable:$true] %s32_s25  ;;  %s23_s27 = int_to_ptr.vmem [resolvable:$true] %s22_s27 }
   0x5   :  { %s586_s28 = scalar_lea.vmem %s33_s25, 128  ;;  %p591_p1 = scmp.lt.s32.totalorder %s33_s25, %s33_s25 }
   0x6   :  { %p587_p0 = scmp.ne.s32.totalorder %s33_s25, %s586_s28  ;;  %p592_p2 = scmp.lt.s32.totalorder %s586_s28, %s586_s28 }
   0x8   :  { %p593_p3 = por %p592_p2, %p591_p1 }
   0xa   :  { %p594_p4 = pnand %p593_p3, %p587_p0 }
   0xc   :  { %597 = shalt.err (!%p594_p4)
}
   0xd   :  { %35 = dma.hbm_to_vmem [thread:$0]  %s761_s1, 128, %s33_s25, [#allocation6]  }
   0xe   :  { %s606_s8 = scalar_lea.vmem %s23_s27, 128  ;;  %p611_p6 = scmp.lt.s32.totalorder %s23_s27, %s23_s27 }
   0xf   :  { %p607_p5 = scmp.ne.s32.totalorder %s23_s27, %s606_s8  ;;  %p612_p7 = scmp.lt.s32.totalorder %s606_s8, %s606_s8 }
  0x11   :  { %p613_p8 = por %p612_p7, %p611_p6 }
  0x13   :  { %p614_p9 = pnand %p613_p8, %p607_p5 }
  0x15   :  { %617 = shalt.err (!%p614_p9)
}
  0x16   :  { %25 = dma.hbm_to_vmem [thread:$0]  %s760_s0, 128, %s23_s27, [#allocation3]  }
  0x17   :  { %s688_s11 = smov [#allocation7]  }
  0x18   :  { %s43_s12 = sshll.u32 %s688_s11, 4  ;;  %s44_s12 = int_to_ptr.vmem [resolvable:$true] %s43_s12 }
  0x19   :  { %s626_s13 = scalar_lea.vmem %s44_s12, 2048  ;;  %p631_p11 = scmp.lt.s32.totalorder %s44_s12, %s44_s12 }
  0x1a   :  { %p627_p10 = scmp.ne.s32.totalorder %s44_s12, %s626_s13  ;;  %p632_p12 = scmp.lt.s32.totalorder %s626_s13, %s626_s13 }
  0x1c   :  { %p633_p13 = por %p632_p12, %p631_p11 }
  0x1e   :  { %p634_p0 = pnand %p633_p13, %p627_p10 }
  0x20   :  { %637 = shalt.err (!%p634_p0)
}
  0x21   :  { %s689_s1 = smov 64   ;;  %s690_s14 = smov 4  }
  0x22   :  { %49 = dma.hbm_to_vmem [thread:$0]  %s763_s3, 2048, %s44_s12, [#allocation6], %s689_s1, %s689_s1, %s690_s14  }
  0x23   :  { %s691_s17 = smov [#allocation8]  }
  0x24   :  { %s57_s18 = sshll.u32 %s691_s17, 4  ;;  %s58_s18 = int_to_ptr.vmem [resolvable:$true] %s57_s18 }
  0x25   :  { %s646_s0 = scalar_lea.vmem %s58_s18, 1024  ;;  %p651_p2 = scmp.lt.s32.totalorder %s58_s18, %s58_s18 }
  0x26   :  { %p647_p1 = scmp.ne.s32.totalorder %s58_s18, %s646_s0  ;;  %p652_p3 = scmp.lt.s32.totalorder %s646_s0, %s646_s0 }
  0x28   :  { %p653_p4 = por %p652_p3, %p651_p2 }
  0x2a   :  { %p654_p5 = pnand %p653_p4, %p647_p1 }
  0x2c   :  { %657 = shalt.err (!%p654_p5)
}
  0x2d   :  { %63 = dma.hbm_to_vmem [thread:$0]  %s765_s5, 1024, %s58_s18, [#allocation9], %s689_s1, %s689_s1, %s690_s14  }
  0x2e   :  { %678 = dma.done.wait [#allocation3], 128  }
  0x2f   :  { %679 = vsyncadd [#allocation3], 4294967168 }
  0x30   :  { %680 = dma.done.wait [#allocation6], 2176  }
  0x31   :  { %681 = vsyncadd [#allocation6], 4294965120 }
  0x32   :  { %682 = dma.done.wait [#allocation9], 1024  }
  0x33   :  { %683 = vsyncadd [#allocation9], 4294966272  ;;  %v692_v0 = vmov 0   ;;  %v79_v1 = vld [vmem:[#allocation5] sm:$0xff]  ;;  %vm103_vm0 = vcmask 1043456   ;;  %v80_v2 = vld [vmem:[#allocation2] sm:$0xff]  ;;  %v84_v29 = vlaneseq }
  0x34   :  { %142 = vmatprep.mubr.bf16.mxu0 %v692_v0  ;;  %v462_v3 = vcombine.high %v79_v1, %v79_v1  ;;  %v461_v4 = vcombine.low %v79_v1, %v79_v1  ;;  %v554_v5 = vld [vmem:[#allocation7 + $0x78] sm:$0xff]   ;;  %v81_v8 = vpack.c.bf16 %v80_v2, %v80_v2  ;;  %v556_v9 = vld [vmem:[#allocation7 + $0x70] sm:$0xff]   ;;  %vm99_vm1 = vcmask 64512   ;;  %v558_v11 = vld [vmem:[#allocation7 + $0x68] sm:$0xff]   ;;  %s695_s24 = smov [#allocation10]  }
  0x35   :  { %v555_v6 = vld [vmem:[#allocation7 + $0x38] sm:$0xff]   ;;  %491 = vmatprep.subr.bf16.mxu1 %v554_v5  ;;  %v557_v10 = vld [vmem:[#allocation7 + $0x30] sm:$0xff]   ;;  %v559_v12 = vld [vmem:[#allocation7 + $0x28] sm:$0xff]   ;;  %v693_v24 = vmov 0.0   ;;  %v85_v30 = vshrl.u32 %v84_v29, 7  ;;  %vm694_vm2 = vmmov 0  }
  0x36   :  { %463 = vmatprep.subr.msk.bf16.mxu0 %vm103_vm0, %v462_v3  ;;  %v105_v7 = vsel %vm103_vm0, %v461_v4, 0  ;;  %492 = vmatpush3.bf16.msra.mxu1 %v555_v6  ;;  %v560_v13 = vld [vmem:[#allocation7 + $0x60] sm:$0xff]   ;;  %v562_v15 = vld [vmem:[#allocation7 + $0x58] sm:$0xff]   ;;  %v564_v17 = vld [vmem:[#allocation7 + $0x50] sm:$0xff]   ;;  %s450_s25 = sshll.u32 %s695_s24, 4  ;;  %s451_s25 = int_to_ptr.vmem [resolvable:$true] %s450_s25 }
  0x37   :  { %125 = vmatpush1.bf16.msra.mxu0 %v105_v7  ;;  %493 = vmatprep.subr.bf16.mxu1 %v556_v9  ;;  %v561_v14 = vld [vmem:[#allocation7 + $0x20] sm:$0xff]   ;;  %v563_v16 = vld [vmem:[#allocation7 + $0x18] sm:$0xff]   ;;  %v565_v18 = vld [vmem:[#allocation7 + $0x10] sm:$0xff]   ;;  %v86_v31 = vsub.s32 0, %v85_v30  ;;  %v90_v33 = vsub.s32 1, %v85_v30  ;;  %p663_p7 = scmp.lt.s32.totalorder %s451_s25, %s451_s25 }
  0x38   :  { %v566_v19 = vld [vmem:[#allocation7 + $0x48] sm:$0xff]   ;;  %v568_v21 = vld [vmem:[#allocation7 + $0x40] sm:$0xff]   ;;  %v570_v23 = vld [vmem:[#allocation8 + $0x38] sm:$0xff]   ;;  %522 = vmatprep.subr.bf16.mxu0 %v693_v24 }
  0x39   :  { %v567_v20 = vld [vmem:[#allocation7 + $0x8] sm:$0xff]   ;;  %v569_v22 = vld [vmem:[#allocation7] sm:$0xff]   ;;  %v571_v25 = vld [vmem:[#allocation8 + $0x30] sm:$0xff]  }
  0x3a   :  { %464 = vmatmul.mubr.msk.bf16.vlgmr.msra.gmra.mxu0 %vm99_vm1, %v81_v8  ;;  %494 = vmatpush3.bf16.msra.mxu1 %v557_v10  ;;  %v572_v26 = vld [vmem:[#allocation8 + $0x28] sm:$0xff]   ;;  %v573_v27 = vld [vmem:[#allocation8 + $0x20] sm:$0xff]   ;;  %v574_v28 = vld [vmem:[#allocation8 + $0x18] sm:$0xff]  }
  0x3b   :  { %495 = vmatprep.subr.bf16.mxu1 %v558_v11  ;;  %523 = vmatpush3.bf16.msra.mxu0 %v570_v23  ;;  %v82_v32 = vld [vmem:[%s762_s2] sm:$0x3]  ;;  %v576_v47 = vld [vmem:[#allocation8 + $0x8] sm:$0xff]   ;;  %v577_v48 = vld [vmem:[#allocation8] sm:$0xff]  }
  0x3c   :  { %524 = vmatprep.subr.bf16.mxu0 %v693_v24  ;;  %v87_v34 = vrot.slane %v82_v32, %v86_v31  ;;  %v91_v35 = vrot.slane %v82_v32, %v90_v33  ;;  %v575_v46 = vld [vmem:[#allocation8 + $0x10] sm:$0xff]   ;;  %538 = vmatprep.mubr.msk.bf16.mxu0 %vm694_vm2, %v693_v24 }
  0x3d   :  { %v465_v50 = vld [vmem:[%s764_s4] ss:$0 sm:$0xff]  ;;  %s658_s4 = scalar_lea.vmem %s451_s25, 128 }
  0x3e   :  { %496 = vmatpush3.bf16.msra.mxu1 %v559_v12  ;;  %v482_v58 = vld [vmem:[%s766_s6] ss:$0 sm:$0xff]  ;;  %p659_p6 = scmp.ne.s32.totalorder %s451_s25, %s658_s4  ;;  %p664_p8 = scmp.lt.s32.totalorder %s658_s4, %s658_s4 }
  0x3f   :  { %497 = vmatprep.subr.bf16.mxu1 %v560_v13  ;;  %525 = vmatpush3.bf16.msra.mxu0 %v571_v25 }
  0x40   :  { %526 = vmatprep.subr.bf16.mxu0 %v693_v24  ;;  %p665_p9 = por %p664_p8, %p663_p7 }
  0x42   :  { %498 = vmatpush3.bf16.msra.mxu1 %v561_v14  ;;  %p666_p10 = pnand %p665_p9, %p659_p6 }
  0x43   :  { %499 = vmatprep.subr.bf16.mxu1 %v562_v15  ;;  %527 = vmatpush3.bf16.msra.mxu0 %v572_v26 }
  0x44   :  { %528 = vmatprep.subr.bf16.mxu0 %v693_v24 }
  0x46   :  { %500 = vmatpush3.bf16.msra.mxu1 %v563_v16 }
  0x47   :  { %501 = vmatprep.subr.bf16.mxu1 %v564_v17  ;;  %529 = vmatpush3.bf16.msra.mxu0 %v573_v27 }
  0x48   :  { %530 = vmatprep.subr.bf16.mxu0 %v693_v24 }
  0x4a   :  { %502 = vmatpush3.bf16.msra.mxu1 %v565_v18 }
  0x4b   :  { %503 = vmatprep.subr.bf16.mxu1 %v566_v19  ;;  %531 = vmatpush3.bf16.msra.mxu0 %v574_v28 }
  0x4c   :  { %532 = vmatprep.subr.bf16.mxu0 %v693_v24 }
  0x4e   :  { %504 = vmatpush3.bf16.msra.mxu1 %v567_v20 }
  0x4f   :  { %505 = vmatprep.subr.bf16.mxu1 %v568_v21  ;;  %533 = vmatpush3.bf16.msra.mxu0 %v575_v46 }
  0x50   :  { %534 = vmatprep.subr.bf16.mxu0 %v693_v24 }
  0x52   :  { %506 = vmatpush3.bf16.msra.mxu1 %v569_v22 }
  0x53   :  { %535 = vmatpush3.bf16.msra.mxu0 %v576_v47 }
  0x54   :  { %536 = vmatprep.subr.bf16.mxu0 %v693_v24 }
  0x57   :  { %537 = vmatpush3.bf16.msra.mxu0 %v577_v48 }
  0xfa   :  { %v144_v36 = vpop.f32.mrf.mxu0 }
  0xfb   :  { %v145_v37 = vadd.f32 %v144_v36, %v87_v34 }
  0xfc   :  { %v146_v38 = vpop.f32.mrf.mxu0 }
  0xfd   :  { %v147_v39 = vadd.f32 %v146_v38, %v91_v35  ;;  %v151_v40 = vmax.f32 %v145_v37, 0.0 }
  0xfe   :  { %v148_v41 = vpop.f32.mrf.mxu0 }
  0xff   :  { %v152_v42 = vmax.f32 %v147_v39, 0.0  ;;  %v153_v45 = vpack.c.bf16 %v151_v40, %v151_v40 }
 0x100   :  { %v149_v43 = vpop.f32.mrf.mxu0 }
 0x101   :  { %v154_v44 = vpack.c.bf16 %v152_v42, %v152_v42 }
 0x103   :  { %322 = vmatprep.mubr.bf16.mxu1 %v154_v44 }
 0x104   :  { %323 = vmatmul.mubr.bf16.vlgmr.msra.gmra.mxu1 %v153_v45 }
 0x1c4   :  { %v507_v49 = vpop.f32.mrf.mxu1 }
 0x1c6   :  { %v508_v51 = vpop.f32.mrf.mxu1 }
 0x1c7   :  { %v509_v52 = vadd.f32 %v508_v51, %v507_v49 }
 0x1c8   :  { %v510_v53 = vpop.f32.mrf.mxu1 }
 0x1c9   :  { %v325_v54 = vadd.f32 %v509_v52, %v465_v50 }
 0x1ca   :  { %v511_v55 = vpop.f32.mrf.mxu1 }
 0x1cb   :  { %v330_v56 = vmax.f32 %v325_v54, 0.0 }
 0x1cd   :  { %v331_v57 = vpack.c.bf16 %v330_v56, %v330_v56 }
 0x1cf   :  { %539 = vmatmul.mubr.bf16.vlgmr.msra.gmra.mxu0 %v331_v57 }
 0x28f   :  { %v437_v59 = vpop.f32.mrf.mxu0 }
 0x290   :  { %v438_v60 = vadd.f32 %v482_v58, %v437_v59 }
 0x291   :  { %v540_v61 = vpop.f32.mrf.mxu0 }
 0x292   :  { %443 = vst [vmem:[#allocation10] sm:$0xff] %v438_v60 }
 0x293   :  { %v440_v62 = vpop.f32.mrf.mxu0 }
 0x294   :  { %669 = shalt.err (!%p666_p10)
}
 0x295   :  { %453 = dma.vmem_to_hbm [thread:$0]  %s451_s25, 128, %s767_s7, [#allocation4]   ;;  %v541_v63 = vpop.f32.mrf.mxu0 }
 0x296   :  { %684 = dma.done.wait [#allocation4], 128  }
 0x297   :  { %685 = vsyncadd [#allocation4], 4294967168 }
 0x298   :  { %457 = vsyncpa [#allocation3], 1 }
 0x299   :  { %458 = vsyncpa [#allocation6], 1 }
 0x29a   :  { %459 = vsyncpa [#allocation9], 1 }
 0x29b   :  { %460 = vsyncpa [#allocation4], 1 }

</bundles_post_ra>
